<compile_context>
chip_gen: v6e
topology: v6e:2x2x1
jax: 0.10.0
libtpu: 0.0.40
codegen_flags: <defaults>
</compile_context>

<pallas_src>
import functools

import jax
import jax.numpy as jnp
from jax import lax
from jax.experimental import pallas as pl
from jax.experimental.pallas import tpu as pltpu

_LANES = 128
_MAX_TILE_ROWS = 8192                 # 8192 x 128 f32 = 4 MiB / input / buffer
_NUM_CORE_SPLITS = 2                  # v7x: 2 TCs; harmless (serial) on v5e/v6e
_DEFAULT_MIN_KERNEL_ELEMS = 1 << 16   # below ~256 KiB, fused XLA mean() wins


def _mse_kernel(s_ref, t_ref, o_ref, acc_ref, *, n_rows, tiles_per_core,
                first_masked_tile, inv_count, needs_mask):
    c = pl.program_id(0)      # core-split axis ("parallel")
    j = pl.program_id(1)      # streaming / reduction axis ("arbitrary")

    # Zero this core's vector accumulator at the start of its row range.
    @pl.when(j == 0)
    def _():
        acc_ref[...] = jnp.zeros_like(acc_ref)

    d = s_ref[...].astype(jnp.float32) - t_ref[...].astype(jnp.float32)
    dsq = d * d

    if needs_mask:
        tile_rows = s_ref.shape[0]
        gt = c * tiles_per_core + j            # global tile index

        # Hot path: full tiles accumulate with no iota/select work.
        @pl.when(gt < first_masked_tile)
        def _():
            acc_ref[...] += dsq.reshape(-1, 8, _LANES).sum(axis=0)

        # Tail / padding tiles: zero the squared differences of rows past
        # n_rows (mask after the square, so garbage NaN/inf cannot leak).
        @pl.when(gt >= first_masked_tile)
        def _():
            row_ids = gt * tile_rows + lax.broadcasted_iota(
                jnp.int32, dsq.shape, 0)
            masked = jnp.where(row_ids < n_rows, dsq, 0.0)
            acc_ref[...] += masked.reshape(-1, 8, _LANES).sum(axis=0)
    else:
        acc_ref[...] += dsq.reshape(-1, 8, _LANES).sum(axis=0)

    # One cross-lane reduce + scale per core, on its last step only.
    @pl.when(j == pl.num_programs(1) - 1)
    def _():
        o_ref[0, 0] = jnp.sum(acc_ref[...]) * jnp.float32(inv_count)


def cam_loss(student_cam, teacher_cam, batch_size=None, *,
             min_kernel_elems=_DEFAULT_MIN_KERNEL_ELEMS):
    """MSE loss between student_cam and teacher_cam (scalar, float32).

    batch_size is unused (nn.MSELoss 'mean' averages over all elements);
    kept only for signature parity with the PyTorch module.
    """
    assert student_cam.shape == teacher_cam.shape
    n_elems = int(student_cam.size)
    rows, rem = divmod(n_elems, _LANES)

    s_item = jnp.dtype(student_cam.dtype).itemsize
    t_item = jnp.dtype(teacher_cam.dtype).itemsize
    # Dtype-aware sublane tile minimum: 8 (f32), 16 (bf16), 32 (int8/fp8).
    sub_mult = 8 * max(1, 4 // min(s_item, t_item))

    # Small or awkwardly-shaped inputs: kernel launch + per-step overhead
    # loses to XLA's fused elementwise+reduce, so bypass the kernel.
    if rem != 0 or rows < sub_mult or n_elems < min_kernel_elems:
        d = student_cam.astype(jnp.float32) - teacher_cam.astype(jnp.float32)
        return jnp.mean(d * d)

    # Free reshape of the contiguous NCHW tensor to a lane-dense (rows, 128)
    # slab — no jnp.pad, no extra HBM read+write of either input.
    s2d = student_cam.reshape(rows, _LANES)
    t2d = teacher_cam.reshape(rows, _LANES)

    # Biggest dtype-legal row tile that fits the VMEM budget and the array.
    tile_rows = min(_MAX_TILE_ROWS, (rows // sub_mult) * sub_mult)
    n_tiles = pl.cdiv(rows, tile_rows)

    # Split the tile range across TensorCores (worth up to ~2x on v7x; the
    # leading "parallel" axis simply serializes on single-core chips).
    n_cores = min(_NUM_CORE_SPLITS, n_tiles)
    tiles_per_core = pl.cdiv(n_tiles, n_cores)

    has_ragged_tail = (rows % tile_rows) != 0
    has_pad_tiles = tiles_per_core * n_cores > n_tiles
    needs_mask = has_ragged_tail or has_pad_tiles
    # First global tile index that needs any masking (tail and/or padding).
    first_masked_tile = (n_tiles - 1) if has_ragged_tail else n_tiles

    if has_pad_tiles:
        # Clamp padding tiles to the last real tile (their rows are fully
        # masked in-kernel); keeping the block index constant also lets the
        # pipeline skip the redundant DMA.
        def in_map(c, j):
            return (jnp.minimum(c * tiles_per_core + j, n_tiles - 1), 0)
    else:
        def in_map(c, j):
            return (c * tiles_per_core + j, 0)

    kernel = functools.partial(
        _mse_kernel,
        n_rows=rows,
        tiles_per_core=tiles_per_core,
        first_masked_tile=first_masked_tile,
        inv_count=1.0 / n_elems,
        needs_mask=needs_mask,
    )

    # Double-buffered input tiles + accumulator + headroom; raising the limit
    # explicitly keeps 8192-row tiles legal on v5e's 16 MiB scoped default
    # while staying far under v7x's 64 MiB physical VMEM.
    tile_bytes = tile_rows * _LANES * (s_item + t_item)
    vmem_limit = int(2 * tile_bytes + (4 << 20))

    out = pl.pallas_call(
        kernel,
        out_shape=jax.ShapeDtypeStruct((n_cores, 1), jnp.float32),
        grid_spec=pltpu.PrefetchScalarGridSpec(
            num_scalar_prefetch=0,
            grid=(n_cores, tiles_per_core),
            in_specs=[
                pl.BlockSpec((tile_rows, _LANES), in_map),
                pl.BlockSpec((tile_rows, _LANES), in_map),
            ],
            out_specs=pl.BlockSpec(
                (1, 1), lambda c, j: (c, 0),
                memory_space=pltpu.MemorySpace.SMEM,
            ),
            scratch_shapes=[pltpu.VMEM((8, _LANES), jnp.float32)],
        ),
        compiler_params=pltpu.CompilerParams(
            dimension_semantics=("parallel", "arbitrary"),
            vmem_limit_bytes=vmem_limit,
        ),
        cost_estimate=pl.CostEstimate(
            flops=3 * n_elems,
            transcendentals=0,
            bytes_accessed=n_elems * (s_item + t_item) + 4 * n_cores,
        ),
    )(s2d, t2d)

    # Sum of per-core partial means (each already scaled by 1/n_elems).
    return jnp.sum(out)


if __name__ == "__main__":
    key = jax.random.PRNGKey(0)
    k1, k2, k3, k4 = jax.random.split(key, 4)

    # 1) CAM maps at the module's natural small NCHW shape, forced onto the
    #    kernel path (single tile, single core, no mask): rows = 2048/128 = 16.
    student = jax.random.normal(k1, (2, 4, 16, 16), dtype=jnp.float32)
    teacher = jax.random.normal(k2, (2, 4, 16, 16), dtype=jnp.float32)
    loss = jax.block_until_ready(cam_loss(student, teacher, batch_size=2,
                                          min_kernel_elems=0))
    ref = jnp.mean((student - teacher) ** 2)
    assert jnp.allclose(loss, ref, rtol=1e-5, atol=1e-6), (loss, ref)

    # 2) Shape exercising the core-split grid + masked ragged tail tile
    #    (2*5*16*16 = 2560 elems -> rows = 20, tile_rows = 16, 2 tiles over
    #     a (2, 1) grid; core 1's tile carries the masked tail).
    s2 = jax.random.normal(k3, (2, 5, 16, 16), dtype=jnp.float32)
    t2 = jax.random.normal(k4, (2, 5, 16, 16), dtype=jnp.float32)
    loss2 = jax.block_until_ready(cam_loss(s2, t2, batch_size=2,
                                           min_kernel_elems=0))
    ref2 = jnp.mean((s2 - t2) ** 2)
    assert jnp.allclose(loss2, ref2, rtol=1e-5, atol=1e-6), (loss2, ref2)

    # 3) bf16 inputs on the kernel path (16-row sublane minimum, in-kernel
    #    cast to f32).
    s3 = student.astype(jnp.bfloat16)
    t3 = teacher.astype(jnp.bfloat16)
    loss3 = jax.block_until_ready(cam_loss(s3, t3, batch_size=2,
                                           min_kernel_elems=0))
    ref3 = jnp.mean((s3.astype(jnp.float32) - t3.astype(jnp.float32)) ** 2)
    assert jnp.allclose(loss3, ref3, rtol=1e-4, atol=1e-5), (loss3, ref3)

    # 4) Default dispatch (small input -> fused XLA bypass) stays correct.
    loss4 = jax.block_until_ready(cam_loss(student, teacher, batch_size=2))
    assert jnp.allclose(loss4, ref, rtol=1e-5, atol=1e-6), (loss4, ref)

    print("KERNEL_OK")
</pallas_src>

<mosaic_0001>
module attributes {stable_mosaic.version = 11 : i64} {
  func.func @_mse_kernel(%arg0: i32, %arg1: i32, %arg2: memref<16x128xf32, #tpu.memory_space<vmem>>, %arg3: memref<16x128xf32, #tpu.memory_space<vmem>>, %arg4: memref<1x1xf32, #tpu.memory_space<smem>>, %arg5: memref<8x128xf32, #tpu.memory_space<vmem>>) attributes {dimension_semantics = [#tpu.dimension_semantics<parallel>, #tpu.dimension_semantics<arbitrary>], iteration_bounds = array<i64: 1, 1>, scalar_prefetch = 0 : i64, scratch_operands = 1 : i64, tpu.core_type = #tpu.core_type<tc>, window_params = [{transform_indices = @transform_0, window_bounds = array<i64: 16, 128>}, {transform_indices = @transform_1, window_bounds = array<i64: 16, 128>}, {transform_indices = @transform_2, window_bounds = array<i64: 1, 1>}]} {
    %c0_i32 = arith.constant 0 : i32
    %0 = arith.cmpi eq, %arg1, %c0_i32 : i32
    %1 = arith.extui %0 : i1 to i32
    %c0_i32_0 = arith.constant 0 : i32
    %2 = arith.cmpi ne, %1, %c0_i32_0 : i32
    scf.if %2 {
      %cst_10 = arith.constant 0.000000e+00 : f32
      %15 = vector.broadcast %cst_10 : f32 to vector<8x128xf32>
      %c0_11 = arith.constant 0 : index
      %c0_12 = arith.constant 0 : index
      %16 = vector.load %arg5[%c0_11, %c0_12] : memref<8x128xf32, #tpu.memory_space<vmem>>, vector<8x128xf32>
      tpu.vector_store %arg5[%c0_11, %c0_12], %15 {strides = array<i32>} : memref<8x128xf32, #tpu.memory_space<vmem>>, vector<8x128xf32>,
    } else {
    }
    %c0 = arith.constant 0 : index
    %c0_1 = arith.constant 0 : index
    %3 = vector.load %arg2[%c0, %c0_1] : memref<16x128xf32, #tpu.memory_space<vmem>>, vector<16x128xf32>
    %c0_2 = arith.constant 0 : index
    %c0_3 = arith.constant 0 : index
    %4 = vector.load %arg3[%c0_2, %c0_3] : memref<16x128xf32, #tpu.memory_space<vmem>>, vector<16x128xf32>
    %5 = arith.subf %3, %4 : vector<16x128xf32>
    %6 = arith.mulf %5, %5 : vector<16x128xf32>
    %c0_4 = arith.constant 0 : index
    %c0_5 = arith.constant 0 : index
    %7 = vector.load %arg5[%c0_4, %c0_5] : memref<8x128xf32, #tpu.memory_space<vmem>>, vector<8x128xf32>
    %8 = vector.shape_cast %6 : vector<16x128xf32> to vector<2x8x128xf32>
    %cst = arith.constant dense<0.000000e+00> : vector<8x128xf32>
    %9 = vector.multi_reduction <add>, %8, %cst [0] : vector<2x8x128xf32> to vector<8x128xf32>
    %10 = arith.addf %7, %9 : vector<8x128xf32>
    %c0_6 = arith.constant 0 : index
    %c0_7 = arith.constant 0 : index
    %11 = vector.load %arg5[%c0_6, %c0_7] : memref<8x128xf32, #tpu.memory_space<vmem>>, vector<8x128xf32>
    tpu.vector_store %arg5[%c0_6, %c0_7], %10 {strides = array<i32>} : memref<8x128xf32, #tpu.memory_space<vmem>>, vector<8x128xf32>,
    %c0_i32_8 = arith.constant 0 : i32
    %12 = arith.cmpi eq, %arg1, %c0_i32_8 : i32
    %13 = arith.extui %12 : i1 to i32
    %c0_i32_9 = arith.constant 0 : i32
    %14 = arith.cmpi ne, %13, %c0_i32_9 : i32
    scf.if %14 {
      %c0_10 = arith.constant 0 : index
      %c0_11 = arith.constant 0 : index
      %15 = vector.load %arg5[%c0_10, %c0_11] : memref<8x128xf32, #tpu.memory_space<vmem>>, vector<8x128xf32>
      %16 = vector.shape_cast %15 : vector<8x128xf32> to vector<1x8x128xf32>
      %cst_12 = arith.constant dense<0.000000e+00> : vector<1xf32>
      %17 = vector.multi_reduction <add>, %16, %cst_12 [1, 2] : vector<1x8x128xf32> to vector<1xf32>
      %18 = vector.shape_cast %17 : vector<1xf32> to vector<1x1x1xf32>
      %19 = vector.extract %18[0, 0, 0] : f32 from vector<1x1x1xf32>
      %cst_13 = arith.constant 4.8828125E-4 : f32
      %20 = arith.mulf %19, %cst_13 : f32
      %c0_14 = arith.constant 0 : index
      %c0_15 = arith.constant 0 : index
      %21 = memref.load %arg4[%c0_14, %c0_15] : memref<1x1xf32, #tpu.memory_space<smem>>
      memref.store %20, %arg4[%c0_14, %c0_15] : memref<1x1xf32, #tpu.memory_space<smem>>
    } else {
    }
    return
  }
  func.func @transform_0(%arg0: i32, %arg1: i32) -> (i32, i32) {
    %c1_i32 = arith.constant 1 : i32
    %0 = arith.muli %arg0, %c1_i32 : i32
    %1 = arith.addi %0, %arg1 : i32
    %c0_i32 = arith.constant 0 : i32
    %c0_i32_0 = arith.constant 0 : i32
    return %1, %c0_i32 : i32, i32
  }
  func.func @transform_1(%arg0: i32, %arg1: i32) -> (i32, i32) {
    %c1_i32 = arith.constant 1 : i32
    %0 = arith.muli %arg0, %c1_i32 : i32
    %1 = arith.addi %0, %arg1 : i32
    %c0_i32 = arith.constant 0 : i32
    %c0_i32_0 = arith.constant 0 : i32
    return %1, %c0_i32 : i32, i32
  }
  func.func @transform_2(%arg0: i32, %arg1: i32) -> (i32, i32) {
    %c0_i32 = arith.constant 0 : i32
    %c0_i32_0 = arith.constant 0 : i32
    return %arg0, %c0_i32 : i32, i32
  }
}

</mosaic_0001>

<bundles_post_ra>
// kernel: tpu_custom_call.1
= control target key start
LH: loop header
LB: loop body
LE: loop exit
PB: predicated region body
PF: predicated region fallthrough
CT: control target
= control target key end

     0   :  { %7 = vsyncpa [#allocation4], 0  ;;  %s190_s0 = inlined_call_operand.hbm [shape: f32[16,128], index: 0, kind: input, shape index: {}]   ;;  %s191_s1 = inlined_call_operand.hbm [shape: f32[16,128], index: 1, kind: input, shape index: {}]   ;;  %s192_s2 = inlined_call_operand.hbm [shape: f32[1,1], index: 2, kind: output, shape index: {}]  }
   0x1   :  { %8 = vsyncpa [#allocation7], 0 }
   0x2   :  { %9 = vsyncpa [#allocation5], 0  ;;  %s161_s9 = smov [#allocation3]  }
   0x3   :  { %s19_s10 = sshll.u32 %s161_s9, 4  ;;  %s20_s10 = int_to_ptr.vmem [resolvable:$true] %s19_s10 }
   0x4   :  { %s115_s11 = scalar_lea.vmem %s20_s10, 256  ;;  %p120_p1 = scmp.lt.s32.totalorder %s20_s10, %s20_s10 }
   0x5   :  { %p116_p0 = scmp.ne.s32.totalorder %s20_s10, %s115_s11  ;;  %p121_p2 = scmp.lt.s32.totalorder %s115_s11, %s115_s11 }
   0x7   :  { %p122_p3 = por %p121_p2, %p120_p1 }
   0x9   :  { %p123_p4 = pnand %p122_p3, %p116_p0 }
   0xb   :  { %126 = shalt.err (!%p123_p4)
}
   0xc   :  { %s162_s12 = smov 128   ;;  %s163_s13 = smov 8  }
   0xd   :  { %25 = dma.hbm_to_vmem [thread:$0]  %s190_s0, 256, %s20_s10, [#allocation4], %s162_s12, %s162_s12, %s163_s13  }
   0xe   :  { %s164_s16 = smov [#allocation6]  }
   0xf   :  { %s35_s17 = sshll.u32 %s164_s16, 4  ;;  %s36_s17 = int_to_ptr.vmem [resolvable:$true] %s35_s17 }
  0x10   :  { %s135_s18 = scalar_lea.vmem %s36_s17, 256  ;;  %p140_p6 = scmp.lt.s32.totalorder %s36_s17, %s36_s17 }
  0x11   :  { %p136_p5 = scmp.ne.s32.totalorder %s36_s17, %s135_s18  ;;  %p141_p7 = scmp.lt.s32.totalorder %s135_s18, %s135_s18 }
  0x13   :  { %p142_p8 = por %p141_p7, %p140_p6 }
  0x15   :  { %p143_p9 = pnand %p142_p8, %p136_p5 }
  0x17   :  { %146 = shalt.err (!%p143_p9)
}
  0x18   :  { %41 = dma.hbm_to_vmem [thread:$0]  %s191_s1, 256, %s36_s17, [#allocation7], %s162_s12, %s162_s12, %s163_s13  }
  0x19   :  { %155 = dma.done.wait [#allocation4], 256  }
  0x1a   :  { %156 = vsyncadd [#allocation4], 4294967040 }
  0x1b   :  { %157 = dma.done.wait [#allocation7], 256  }
  0x1c   :  { %158 = vsyncadd [#allocation7], 4294967040  ;;  %v57_v0 = vld [vmem:[#allocation3] sm:$0xff]  ;;  %v58_v1 = vld [vmem:[#allocation3 + $0x8] sm:$0xff]  ;;  %s165_s21 = smov [#allocation8]  }
  0x1d   :  { %v59_v2 = vld [vmem:[#allocation6] sm:$0xff]  ;;  %v60_v3 = vld [vmem:[#allocation6 + $0x8] sm:$0xff] }
  0x1e   :  { %v61_v4 = vsub.f32 %v57_v0, %v59_v2  ;;  %v62_v5 = vsub.f32 %v58_v1, %v60_v3 }
  0x20   :  { %v63_v6 = vmul.f32 %v61_v4, %v61_v4  ;;  %v64_v7 = vmul.f32 %v62_v5, %v62_v5 }
  0x22   :  { %v66_v8 = vadd.f32 %v64_v7, %v63_v6 }
  0x24   :  { %73 = vadd.xlane.f32.xlu0 %v66_v8 }
  0xad   :  { %v74_v9 = vpop.xlane.xlu0 %73 }
  0xae   :  { %v75_v10 = vrot.slane %v74_v9, 4 }
  0xb0   :  { %v76_v11 = vadd.f32 %v75_v10, %v74_v9 }
  0xb2   :  { %v77_v12 = vrot.slane %v76_v11, 2 }
  0xb4   :  { %v78_v13 = vadd.f32 %v77_v12, %v76_v11 }
  0xb6   :  { %v79_v14 = vrot.slane %v78_v13, 1 }
  0xb8   :  { %v80_v15 = vadd.f32 %v79_v14, %v78_v13 }
  0xba   :  { %100 = vpush %v80_v15 }
  0xeb   :  { %s101_s0 = spop %100 }
  0xec   :  { %s82_s1 = smul.f32 0.00048828125, %s101_s0 }
  0xee   :  { %84 = sst [smem:[#allocation8]] %s82_s1 }
  0xef   :  { %92 = dma.smem_to_hbm %s165_s21, 16, %s192_s2, [#allocation5]  }
  0xf0   :  { %159 = dma.done.wait [#allocation5], 16  }
  0xf1   :  { %160 = vsyncadd [#allocation5], 4294967280 }
  0xf2   :  { %96 = sfence }
  0xf3   :  { %97 = vsyncpa [#allocation4], 1 }
  0xf4   :  { %98 = vsyncpa [#allocation7], 1 }
  0xf5   :  { %99 = vsyncpa [#allocation5], 1 }

</bundles_post_ra>
